<compile_context>
chip_gen: v7x
topology: tpu7x:2x2x1
jax: 0.10.0
libtpu: 0.0.40
codegen_flags: <defaults>
</compile_context>

<pallas_src>
import jax
import jax.numpy as jnp
import numpy as np
from jax.experimental import pallas as pl
from jax.experimental.pallas import tpu as pltpu


def _round_up(v, m):
    return ((v + m - 1) // m) * m


def _physical_vmem_bytes():
    try:
        info = pltpu.get_tpu_info()
        return int(getattr(info, "vmem_capacity_bytes", 64 << 20))
    except Exception:
        return 64 << 20          # conservative (v7x-sized) fallback


# ----------------------------- Pallas kernel ------------------------------ #
def decoupled_gcn_kernel(gamma_ref, h0_ref, adj_ref, scale_ref, w_out_ref,
                         b_out_ref, out_ref, h_ref, acc_ref):
    """One grid step == one propagation hop (grid=(L,), "arbitrary").

    adj_ref / scale_ref are the current hop's int8 adjacency block and per-row
    dequant scale, streamed (double-buffered) by their BlockSpecs.  h_ref is
    the bf16 carried state, acc_ref the f32 gamma-weighted accumulator.
    """
    hop = pl.program_id(0)

    # hop 0: h = h0 (precomputed relu(x @ W_in + b_in)); acc = gamma[0] * h
    @pl.when(hop == 0)
    def _init():
        h0 = h0_ref[...]
        h_ref[...] = h0.astype(jnp.bfloat16)
        acc_ref[...] = h0 * gamma_ref[0]

    # h <- A_hop @ h  with  A_hop ~= diag(row_scale) @ Q_int8:
    # bf16 MXU matmul on the (exactly representable) int8 values, f32
    # accumulation, then a per-row VPU scale on the N x H result.
    h_new = jnp.dot(adj_ref[...].astype(jnp.bfloat16), h_ref[...],
                    preferred_element_type=jnp.float32) * scale_ref[...]
    h_ref[...] = h_new.astype(jnp.bfloat16)
    # acc += gamma[hop + 1] * h   (f32 elementwise)
    acc_ref[...] = acc_ref[...] + h_new * gamma_ref[hop + 1]

    # last hop: y = acc @ W_out + b_out (bf16 MXU operands, f32 accumulate).
    @pl.when(hop == pl.num_programs(0) - 1)
    def _finalize():
        y = jnp.dot(acc_ref[...].astype(jnp.bfloat16), w_out_ref[...],
                    preferred_element_type=jnp.float32)
        out_ref[...] = y + b_out_ref[...]


# ---------------------- one-time per-graph adjacency prep ------------------ #
def prepare_adjacency(adj_stack):
    """Pads N up to a lane-dense multiple of 128 and quantizes each hop's
    normalized adjacency to int8 with a per-row scale:
        A[i] ~= diag(row_scale[i]) @ Q[i],   Q int8 in [-127, 127].
    Call ONCE per (static) graph; do NOT put this in the forward path.
    Returns (Q [L, n_p, n_p] int8, row_scale [L, n_p, 1] f32).
    """
    num_layers, n, _ = adj_stack.shape
    n_p = _round_up(n, 128)
    adj_p = jnp.zeros((num_layers, n_p, n_p), jnp.float32)
    adj_p = adj_p.at[:, :n, :n].set(adj_stack.astype(jnp.float32))
    row_max = jnp.max(jnp.abs(adj_p), axis=2, keepdims=True)        # [L,n_p,1]
    row_scale = jnp.where(row_max > 0.0, row_max / 127.0, 1.0)
    q = jnp.clip(jnp.round(adj_p / row_scale), -127.0, 127.0).astype(jnp.int8)
    return q, row_scale


# ------------------------------- wrapper ----------------------------------- #
def decoupled_gcn_forward(x, adj_q, row_scale, params):
    """x: [N, F] f32; adj_q / row_scale: output of prepare_adjacency."""
    n, _ = x.shape
    num_layers, n_p, _ = adj_q.shape
    assert num_layers >= 1, "grid-over-hops kernel requires num_layers >= 1"
    assert n <= n_p and n_p % 128 == 0
    h_dim = params["w_in"].shape[1]
    c_dim = params["w_out"].shape[1]

    # Lane-dense padding of hidden/class dims.  v6e/v7x MXUs are 256 wide, so
    # keep H a multiple of 256 once it exceeds 128.
    h_p = _round_up(h_dim, 256) if h_dim > 128 else 128
    c_p = _round_up(c_dim, 128)

    f32 = jnp.float32
    # Input projection hoisted to XLA (used only at hop 0).  Pad with zeros so
    # padded rows never carry relu(b_in) garbage into the kernel state.
    h0 = jnp.maximum(x.astype(f32) @ params["w_in"] + params["b_in"], 0.0)
    h0_p = jnp.zeros((n_p, h_p), f32).at[:n, :h_dim].set(h0)

    w_out_p = jnp.zeros((h_p, c_p), jnp.bfloat16)
    w_out_p = w_out_p.at[:h_dim, :c_dim].set(params["w_out"].astype(jnp.bfloat16))
    b_out_p = jnp.zeros((1, c_p), f32).at[0, :c_dim].set(params["b_out"])

    # softmax over per-hop mixing weights (dim=0) — tiny parameter glue.
    gamma = jax.nn.softmax(params["layer_weight"].astype(f32))

    const2 = lambda i, g: (0, 0)

    # VMEM budget: default pipelining double-buffers each streamed block.
    resident_bytes = (
        2 * n_p * n_p * 1                        # int8 adjacency stream (2 bufs)
        + 2 * ((n_p // 8) * 4096)                # row-scale blocks (tile-padded)
        + 2 * n_p * h_p * 4                      # h0 (constant block)
        + 2 * h_p * c_p * 2 + 2 * 8 * 128 * 4    # W_out (bf16), b_out
        + 2 * n_p * c_p * 4                      # output
        + n_p * h_p * 2 + n_p * h_p * 4          # h (bf16) / acc (f32) scratch
    )
    vmem_cap = max(_physical_vmem_bytes() - (16 << 20), 32 << 20)
    vmem_limit = int(min(max(resident_bytes + (8 << 20), 32 << 20), vmem_cap))

    out = pl.pallas_call(
        decoupled_gcn_kernel,
        out_shape=jax.ShapeDtypeStruct((n_p, c_p), jnp.float32),
        grid_spec=pltpu.PrefetchScalarGridSpec(
            num_scalar_prefetch=1,               # gamma -> SMEM
            grid=(num_layers,),
            in_specs=[
                pl.BlockSpec((n_p, h_p), const2),                      # h0
                pl.BlockSpec((pl.Squeezed(), n_p, n_p),
                             lambda i, g: (i, 0, 0)),                  # Q_i
                pl.BlockSpec((pl.Squeezed(), n_p, 1),
                             lambda i, g: (i, 0, 0)),                  # scale_i
                pl.BlockSpec((h_p, c_p), const2),                      # W_out
                pl.BlockSpec((1, c_p), const2),                        # b_out
            ],
            out_specs=pl.BlockSpec((n_p, c_p), const2),
            scratch_shapes=[pltpu.VMEM((n_p, h_p), jnp.bfloat16),      # h
                            pltpu.VMEM((n_p, h_p), jnp.float32)],      # acc
        ),
        compiler_params=pltpu.CompilerParams(
            dimension_semantics=("arbitrary",),
            vmem_limit_bytes=vmem_limit),
    )(gamma, h0_p, adj_q, row_scale, w_out_p, b_out_p)

    return out[:n, :c_dim]


# --------------------------- parameter creation ---------------------------- #
def init_params(key, features_dim, hidden_dim, num_classes, num_layers, alpha):
    k1, k2, k3, k4 = jax.random.split(key, 4)

    # nn.Linear default init: U(-1/sqrt(fan_in), 1/sqrt(fan_in))
    bi = 1.0 / np.sqrt(features_dim)
    bo = 1.0 / np.sqrt(hidden_dim)
    w_in = jax.random.uniform(k1, (features_dim, hidden_dim), jnp.float32, -bi, bi)
    b_in = jax.random.uniform(k2, (hidden_dim,), jnp.float32, -bi, bi)
    w_out = jax.random.uniform(k3, (hidden_dim, num_classes), jnp.float32, -bo, bo)
    b_out = jax.random.uniform(k4, (num_classes,), jnp.float32, -bo, bo)

    # layer_weight init exactly as in the module
    temp = alpha * (1.0 - alpha) ** np.arange(num_layers + 1)
    temp[-1] = (1.0 - alpha) ** num_layers
    layer_weight = jnp.asarray(np.log(temp), dtype=jnp.float32)

    return dict(w_in=w_in, b_in=b_in, w_out=w_out, b_out=b_out,
                layer_weight=layer_weight)


def make_norm_adjacency(key, num_layers, n):
    """Dense symmetrically-normalized adjacency (with self loops) per hop."""
    adjs = []
    for i in range(num_layers):
        k = jax.random.fold_in(key, i)
        a = (jax.random.uniform(k, (n, n)) < 0.15).astype(jnp.float32)
        a = jnp.maximum(a, a.T)                     # symmetrize
        a = a + jnp.eye(n, dtype=jnp.float32)       # self loops
        d = jnp.sum(a, axis=1)
        d_inv_sqrt = 1.0 / jnp.sqrt(d)
        a = a * d_inv_sqrt[:, None] * d_inv_sqrt[None, :]
        adjs.append(a)
    return jnp.stack(adjs, axis=0)


# ------------------------- pure-JAX references ------------------------------ #
def reference_forward(x, adj_stack, params):
    """Exact f32 semantics (batch_norm output discarded; dropout p=0)."""
    gamma = jax.nn.softmax(params["layer_weight"])
    h = jnp.maximum(x @ params["w_in"] + params["b_in"], 0.0)
    acc = gamma[0] * h
    for i in range(adj_stack.shape[0]):
        h = adj_stack[i] @ h
        acc = acc + gamma[i + 1] * h
    return acc @ params["w_out"] + params["b_out"]


def reference_forward_quantized(x, adj_q, row_scale, params):
    """Mirrors the kernel numerics: int8 adjacency + bf16 hop/output matmuls."""
    n = x.shape[0]
    gamma = jax.nn.softmax(params["layer_weight"])
    h = jnp.maximum(x @ params["w_in"] + params["b_in"], 0.0)
    acc = gamma[0] * h
    h_bf = h.astype(jnp.bfloat16)
    for i in range(adj_q.shape[0]):
        q = adj_q[i, :n, :n].astype(jnp.bfloat16)
        h_new = jnp.dot(q, h_bf, preferred_element_type=jnp.float32)
        h_new = h_new * row_scale[i, :n, :]
        acc = acc + gamma[i + 1] * h_new
        h_bf = h_new.astype(jnp.bfloat16)
    y = jnp.dot(acc.astype(jnp.bfloat16), params["w_out"].astype(jnp.bfloat16),
                preferred_element_type=jnp.float32)
    return y + params["b_out"]


# ---------------------------------- main ----------------------------------- #
if __name__ == "__main__":
    N, F, H, C, L = 64, 16, 32, 8, 3
    ALPHA = 0.1

    key = jax.random.PRNGKey(0)
    kx, kp, ka = jax.random.split(key, 3)

    x = jax.random.normal(kx, (N, F), dtype=jnp.float32)
    params = init_params(kp, F, H, C, L, ALPHA)
    adj_stack = make_norm_adjacency(ka, L, N)

    # One-time per-graph prep (hoisted OUT of the forward path per perf review).
    adj_q, row_scale = prepare_adjacency(adj_stack)
    adj_q, row_scale = jax.block_until_ready((adj_q, row_scale))

    # TODO(synk): BatchNorm1d running-stat update (a training-time side effect
    # whose output the original forward discards) is not modeled.

    forward = jax.jit(decoupled_gcn_forward)
    out = forward(x, adj_q, row_scale, params)
    out = jax.block_until_ready(out)

    # Reference mirroring the kernel's int8/bf16 numerics (tight tolerance).
    ref_q = reference_forward_quantized(x, adj_q, row_scale, params)
    np.testing.assert_allclose(np.asarray(out), np.asarray(ref_q),
                               rtol=1e-4, atol=1e-4)
    # Full-f32 reference (loose tolerance bounding int8 + bf16 hop error).
    ref_f32 = reference_forward(x, adj_stack, params)
    np.testing.assert_allclose(np.asarray(out), np.asarray(ref_f32),
                               rtol=5e-2, atol=5e-2)

    print("KERNEL_OK")
</pallas_src>

<mosaic_0001>
module attributes {stable_mosaic.version = 11 : i64} {
  func.func @decoupled_gcn_kernel(%arg0: i32, %arg1: memref<4xf32, #tpu.memory_space<smem>>, %arg2: memref<128x128xf32, #tpu.memory_space<vmem>>, %arg3: memref<1x128x128xi8, #tpu.memory_space<vmem>>, %arg4: memref<1x128x1xf32, #tpu.memory_space<vmem>>, %arg5: memref<128x128xbf16, #tpu.memory_space<vmem>>, %arg6: memref<1x128xf32, #tpu.memory_space<vmem>>, %arg7: memref<128x128xf32, #tpu.memory_space<vmem>>, %arg8: memref<128x128xbf16, #tpu.memory_space<vmem>>, %arg9: memref<128x128xf32, #tpu.memory_space<vmem>>) attributes {dimension_semantics = [#tpu.dimension_semantics<arbitrary>], iteration_bounds = array<i64: 3>, scalar_prefetch = 1 : i64, scratch_operands = 2 : i64, tpu.core_type = #tpu.core_type<tc>, window_params = [{pipeline_mode = #tpu.pipeline_mode<synchronous>, transform_indices = @transform_0, window_bounds = array<i64: 128, 128>}, {transform_indices = @transform_1, window_bounds = array<i64: 1, 128, 128>}, {transform_indices = @transform_2, window_bounds = array<i64: 1, 128, 1>}, {pipeline_mode = #tpu.pipeline_mode<synchronous>, transform_indices = @transform_3, window_bounds = array<i64: 128, 128>}, {pipeline_mode = #tpu.pipeline_mode<synchronous>, transform_indices = @transform_4, window_bounds = array<i64: 1, 128>}, {pipeline_mode = #tpu.pipeline_mode<synchronous>, transform_indices = @transform_5, window_bounds = array<i64: 128, 128>}]} {
    %c0_i32 = arith.constant 0 : i32
    %0 = arith.cmpi eq, %arg0, %c0_i32 : i32
    %1 = arith.extui %0 : i1 to i32
    %c0_i32_0 = arith.constant 0 : i32
    %2 = arith.cmpi ne, %1, %c0_i32_0 : i32
    scf.if %2 {
      %c0_15 = arith.constant 0 : index
      %c0_16 = arith.constant 0 : index
      %25 = vector.load %arg2[%c0_15, %c0_16] : memref<128x128xf32, #tpu.memory_space<vmem>>, vector<128x128xf32>
      %26 = arith.truncf %25 : vector<128x128xf32> to vector<128x128xbf16>
      %c0_17 = arith.constant 0 : index
      %c0_18 = arith.constant 0 : index
      %27 = vector.load %arg8[%c0_17, %c0_18] : memref<128x128xbf16, #tpu.memory_space<vmem>>, vector<128x128xbf16>
      tpu.vector_store %arg8[%c0_17, %c0_18], %26 {strides = array<i32>} : memref<128x128xbf16, #tpu.memory_space<vmem>>, vector<128x128xbf16>,
      %c0_19 = arith.constant 0 : index
      %28 = memref.load %arg1[%c0_19] : memref<4xf32, #tpu.memory_space<smem>>
      %29 = vector.broadcast %28 : f32 to vector<128x128xf32>
      %30 = arith.mulf %25, %29 : vector<128x128xf32>
      %c0_20 = arith.constant 0 : index
      %c0_21 = arith.constant 0 : index
      %31 = vector.load %arg9[%c0_20, %c0_21] : memref<128x128xf32, #tpu.memory_space<vmem>>, vector<128x128xf32>
      tpu.vector_store %arg9[%c0_20, %c0_21], %30 {strides = array<i32>} : memref<128x128xf32, #tpu.memory_space<vmem>>, vector<128x128xf32>,
    } else {
    }
    %c0 = arith.constant 0 : index
    %c0_1 = arith.constant 0 : index
    %c0_2 = arith.constant 0 : index
    %3 = vector.load %arg3[%c0, %c0_1, %c0_2] : memref<1x128x128xi8, #tpu.memory_space<vmem>>, vector<1x128x128xi8>
    %4 = vector.shape_cast %3 : vector<1x128x128xi8> to vector<128x128xi8>
    %5 = arith.sitofp %4 : vector<128x128xi8> to vector<128x128xbf16>
    %c0_3 = arith.constant 0 : index
    %c0_4 = arith.constant 0 : index
    %6 = vector.load %arg8[%c0_3, %c0_4] : memref<128x128xbf16, #tpu.memory_space<vmem>>, vector<128x128xbf16>
    %cst = arith.constant dense<0.000000e+00> : vector<128x128xf32>
    %7 = tpu.matmul %5, %6, %cst {dimension_numbers = #tpu.dot_dimension_numbers<[1], [0], [0], [1], [0, 0, 1, 1], [], []>} : vector<128x128xbf16>, vector<128x128xbf16>, vector<128x128xf32> -> vector<128x128xf32>
    %c0_5 = arith.constant 0 : index
    %c0_6 = arith.constant 0 : index
    %c0_7 = arith.constant 0 : index
    %8 = vector.load %arg4[%c0_5, %c0_6, %c0_7] : memref<1x128x1xf32, #tpu.memory_space<vmem>>, vector<1x128x1xf32>
    %9 = vector.shape_cast %8 : vector<1x128x1xf32> to vector<128x1xf32>
    %10 = vector.broadcast %9 : vector<128x1xf32> to vector<128x128xf32>
    %11 = arith.mulf %7, %10 : vector<128x128xf32>
    %12 = arith.truncf %11 : vector<128x128xf32> to vector<128x128xbf16>
    %c0_8 = arith.constant 0 : index
    %c0_9 = arith.constant 0 : index
    %13 = vector.load %arg8[%c0_8, %c0_9] : memref<128x128xbf16, #tpu.memory_space<vmem>>, vector<128x128xbf16>
    tpu.vector_store %arg8[%c0_8, %c0_9], %12 {strides = array<i32>} : memref<128x128xbf16, #tpu.memory_space<vmem>>, vector<128x128xbf16>,
    %c0_10 = arith.constant 0 : index
    %c0_11 = arith.constant 0 : index
    %14 = vector.load %arg9[%c0_10, %c0_11] : memref<128x128xf32, #tpu.memory_space<vmem>>, vector<128x128xf32>
    %c1_i32 = arith.constant 1 : i32
    %15 = arith.addi %arg0, %c1_i32 : i32
    %16 = arith.index_cast %15 : i32 to index
    %17 = memref.load %arg1[%16] : memref<4xf32, #tpu.memory_space<smem>>
    %18 = vector.broadcast %17 : f32 to vector<128x128xf32>
    %19 = arith.mulf %11, %18 : vector<128x128xf32>
    %20 = arith.addf %14, %19 : vector<128x128xf32>
    %c0_12 = arith.constant 0 : index
    %c0_13 = arith.constant 0 : index
    %21 = vector.load %arg9[%c0_12, %c0_13] : memref<128x128xf32, #tpu.memory_space<vmem>>, vector<128x128xf32>
    tpu.vector_store %arg9[%c0_12, %c0_13], %20 {strides = array<i32>} : memref<128x128xf32, #tpu.memory_space<vmem>>, vector<128x128xf32>,
    %c2_i32 = arith.constant 2 : i32
    %22 = arith.cmpi eq, %arg0, %c2_i32 : i32
    %23 = arith.extui %22 : i1 to i32
    %c0_i32_14 = arith.constant 0 : i32
    %24 = arith.cmpi ne, %23, %c0_i32_14 : i32
    scf.if %24 {
      %c0_15 = arith.constant 0 : index
      %c0_16 = arith.constant 0 : index
      %25 = vector.load %arg9[%c0_15, %c0_16] : memref<128x128xf32, #tpu.memory_space<vmem>>, vector<128x128xf32>
      %26 = arith.truncf %25 : vector<128x128xf32> to vector<128x128xbf16>
      %c0_17 = arith.constant 0 : index
      %c0_18 = arith.constant 0 : index
      %27 = vector.load %arg5[%c0_17, %c0_18] : memref<128x128xbf16, #tpu.memory_space<vmem>>, vector<128x128xbf16>
      %cst_19 = arith.constant dense<0.000000e+00> : vector<128x128xf32>
      %28 = tpu.matmul %26, %27, %cst_19 {dimension_numbers = #tpu.dot_dimension_numbers<[1], [0], [0], [1], [0, 0, 1, 1], [], []>} : vector<128x128xbf16>, vector<128x128xbf16>, vector<128x128xf32> -> vector<128x128xf32>
      %c0_20 = arith.constant 0 : index
      %c0_21 = arith.constant 0 : index
      %29 = vector.load %arg6[%c0_20, %c0_21] : memref<1x128xf32, #tpu.memory_space<vmem>>, vector<1x128xf32>
      %30 = vector.broadcast %29 : vector<1x128xf32> to vector<128x128xf32>
      %31 = arith.addf %28, %30 : vector<128x128xf32>
      %c0_22 = arith.constant 0 : index
      %c0_23 = arith.constant 0 : index
      %32 = vector.load %arg7[%c0_22, %c0_23] : memref<128x128xf32, #tpu.memory_space<vmem>>, vector<128x128xf32>
      tpu.vector_store %arg7[%c0_22, %c0_23], %31 {strides = array<i32>} : memref<128x128xf32, #tpu.memory_space<vmem>>, vector<128x128xf32>,
    } else {
    }
    return
  }
  func.func @transform_0(%arg0: i32, %arg1: memref<4xf32, #tpu.memory_space<smem>>) -> (i32, i32) {
    %c0_i32 = arith.constant 0 : i32
    %c0_i32_0 = arith.constant 0 : i32
    %c0_i32_1 = arith.constant 0 : i32
    return %c0_i32, %c0_i32_0 : i32, i32
  }
  func.func @transform_1(%arg0: i32, %arg1: memref<4xf32, #tpu.memory_space<smem>>) -> (i32, i32, i32) {
    %c0_i32 = arith.constant 0 : i32
    %c0_i32_0 = arith.constant 0 : i32
    %c0_i32_1 = arith.constant 0 : i32
    return %arg0, %c0_i32, %c0_i32_0 : i32, i32, i32
  }
  func.func @transform_2(%arg0: i32, %arg1: memref<4xf32, #tpu.memory_space<smem>>) -> (i32, i32, i32) {
    %c0_i32 = arith.constant 0 : i32
    %c0_i32_0 = arith.constant 0 : i32
    %c0_i32_1 = arith.constant 0 : i32
    return %arg0, %c0_i32, %c0_i32_0 : i32, i32, i32
  }
  func.func @transform_3(%arg0: i32, %arg1: memref<4xf32, #tpu.memory_space<smem>>) -> (i32, i32) {
    %c0_i32 = arith.constant 0 : i32
    %c0_i32_0 = arith.constant 0 : i32
    %c0_i32_1 = arith.constant 0 : i32
    return %c0_i32, %c0_i32_0 : i32, i32
  }
  func.func @transform_4(%arg0: i32, %arg1: memref<4xf32, #tpu.memory_space<smem>>) -> (i32, i32) {
    %c0_i32 = arith.constant 0 : i32
    %c0_i32_0 = arith.constant 0 : i32
    %c0_i32_1 = arith.constant 0 : i32
    return %c0_i32, %c0_i32_0 : i32, i32
  }
  func.func @transform_5(%arg0: i32, %arg1: memref<4xf32, #tpu.memory_space<smem>>) -> (i32, i32) {
    %c0_i32 = arith.constant 0 : i32
    %c0_i32_0 = arith.constant 0 : i32
    %c0_i32_1 = arith.constant 0 : i32
    return %c0_i32, %c0_i32_0 : i32, i32
  }
}

</mosaic_0001>

<bundles_post_ra>
// kernel: decoupled_gcn_forward.1
= control target key start
LH: loop header
LB: loop body
LE: loop exit
PB: predicated region body
PF: predicated region fallthrough
CT: control target
= control target key end

     0   :  { %s1320_s0 = inlined_call_operand.vmem [shape: f32[4], index: 0, kind: input, shape index: {}]   ;;  %s1321_s1 = inlined_call_operand.vmem [shape: f32[128,128], index: 1, kind: input, shape index: {}]   ;;  %s1322_s2 = inlined_call_operand.vmem [shape: s8[3,128,128], index: 2, kind: input, shape index: {}]   ;;  %s1323_s3 = inlined_call_operand.vmem [shape: f32[3,128,1], index: 3, kind: input, shape index: {}]   ;;  %s1324_s4 = inlined_call_operand.vmem [shape: bf16[128,128], index: 4, kind: input, shape index: {}]   ;;  %s1325_s5 = inlined_call_operand.vmem [shape: f32[1,128], index: 5, kind: input, shape index: {}]   ;;  %s1326_s6 = inlined_call_operand.vmem [shape: f32[128,128], index: 6, kind: output, shape index: {}]  }
   0x1   :  { %s11_s23 = sshll.u32 %s1320_s0, 4  ;;  %s12_s23 = int_to_ptr.vmem [resolvable:$true] %s11_s23 }
   0x2   :  { %s1043_s24 = scalar_lea.vmem %s12_s23, 16  ;;  %p1048_p1 = scmp.lt.s32.totalorder %s12_s23, %s12_s23 }
   0x3   :  { %p1044_p0 = scmp.ne.s32.totalorder %s12_s23, %s1043_s24  ;;  %p1049_p2 = scmp.lt.s32.totalorder %s1043_s24, %s1043_s24 }
   0x5   :  { %p1050_p3 = por %p1049_p2, %p1048_p1 }
   0x7   :  { %p1051_p4 = pnand %p1050_p3, %p1044_p0 }
   0x9   :  { %1054 = shalt.err (!%p1051_p4)  }
   0xa   :  { %s1065_s25 = smov [#allocation5]  }
   0xb   :  { %14 = dma.vmem_to_smem %s12_s23, 16, %s1065_s25, [#allocation4] }
   0xc   :  { %1059 = dma.done.wait [#allocation4], 16 }
   0xd   :  { %1060 = vsyncadd [#allocation4], 4294967280 }
   0xe   :  { %16 = sfence }
   0xf   :  { %s1105_s26 = smov 0  }
  0x10 LB: > { %s1111_s0 = sadd.s32 4294967295, %s1063_s26   ;;  %p875_p5 = scmp.ge.s32.totalorder %s1063_s26, 1  ;;  %s1063_s26 = sphi %s1105_s26, %s22_s26  }
  0x11   : > { %p199_p6 = scmp.lt.s32.totalorder %s1063_s26, 4 }
  0x13   : > { %p200_p7 = pnand %p875_p5, %p199_p6 }
  0x14   : > { %p227_p8 = scmp.lt.s32.totalorder (!%p200_p7), %s1111_s0, 2  ;;  %p880_p9 = scmp.ne.s32.totalorder (!%p200_p7), %s1111_s0, 0 }
  0x15   : > { %203 = sbr.rel (%p200_p7) target bundleno = 562 (0x232), region = 40 }
  0x1c   : > { %s228_s27 = scalar_select %p227_p8, %s1111_s0, 2 }
  0x1d   : > { %241 = sbr.rel (%p880_p9) target bundleno = 46 (0x2e), region = 44  ;;  %v242_v0 = vld [vmem:[%s1321_s1] sm:$0xff] (!%p880_p9)  ;;  %v243_v1 = vld [vmem:[%s1321_s1 + $0x8] sm:$0xff] (!%p880_p9)  ;;  %v244_v2 = vld [vmem:[%s1321_s1 + $0x10] sm:$0xff] (!%p880_p9)  ;;  %s274_s18 = sld [smem:[#allocation5]] (!%p880_p9) }
  0x1e   : > { %s893_s28 = sshll.u32 %s228_s27, 5  ;;  %s894_s29 = sshll.u32 %s228_s27, 7  ;;  %v258_v3 = vpack.c.bf16 (!%p880_p9), %v243_v1, %v242_v0  ;;  %v245_v4 = vld [vmem:[%s1321_s1 + $0x18] sm:$0xff] (!%p880_p9)  ;;  %v246_v5 = vld [vmem:[%s1321_s1 + $0x20] sm:$0xff] (!%p880_p9)  ;;  %v247_v6 = vld [vmem:[%s1321_s1 + $0x28] sm:$0xff] (!%p880_p9) }
  0x1f   : > { %s1120_s8 = scalar_lea.vmem %s1322_s2, %s893_s28  ;;  %s1125_s11 = scalar_lea.vmem %s1323_s3, %s894_s29  ;;  %v259_v7 = vpack.c.bf16 (!%p880_p9), %v245_v4, %v244_v2  ;;  %v260_v8 = vpack.c.bf16 (!%p880_p9), %v247_v6, %v246_v5  ;;  %v248_v9 = vld [vmem:[%s1321_s1 + $0x30] sm:$0xff] (!%p880_p9)  ;;  %v249_v10 = vld [vmem:[%s1321_s1 + $0x38] sm:$0xff] (!%p880_p9)  ;;  %v250_v11 = vld [vmem:[%s1321_s1 + $0x40] sm:$0xff] (!%p880_p9) }
  0x20   : > { %266 = vst [vmem:[#allocation2] sm:$0xff] (!%p880_p9), %v258_v3  ;;  %v261_v12 = vpack.c.bf16 (!%p880_p9), %v249_v10, %v248_v9  ;;  %v251_v13 = vld [vmem:[%s1321_s1 + $0x48] sm:$0xff] (!%p880_p9)  ;;  %v252_v14 = vld [vmem:[%s1321_s1 + $0x50] sm:$0xff] (!%p880_p9)  ;;  %v253_v15 = vld [vmem:[%s1321_s1 + $0x58] sm:$0xff] (!%p880_p9) }
  0x21   : > { %267 = vst [vmem:[#allocation2 + $0x8] sm:$0xff] (!%p880_p9), %v259_v7  ;;  %268 = vst [vmem:[#allocation2 + $0x10] sm:$0xff] (!%p880_p9), %v260_v8  ;;  %v262_v16 = vpack.c.bf16 (!%p880_p9), %v251_v13, %v250_v11  ;;  %v263_v17 = vpack.c.bf16 (!%p880_p9), %v253_v15, %v252_v14  ;;  %v254_v18 = vld [vmem:[%s1321_s1 + $0x60] sm:$0xff] (!%p880_p9)  ;;  %v255_v19 = vld [vmem:[%s1321_s1 + $0x68] sm:$0xff] (!%p880_p9) }
  0x22   : > { %v256_v20 = vld [vmem:[%s1321_s1 + $0x70] sm:$0xff] (!%p880_p9)  ;;  %269 = vst [vmem:[#allocation2 + $0x18] sm:$0xff] (!%p880_p9), %v261_v12  ;;  %v264_v21 = vpack.c.bf16 (!%p880_p9), %v255_v19, %v254_v18  ;;  %v257_v22 = vld [vmem:[%s1321_s1 + $0x78] sm:$0xff] (!%p880_p9) }
  0x23   : > { %270 = vst [vmem:[#allocation2 + $0x20] sm:$0xff] (!%p880_p9), %v262_v16  ;;  %271 = vst [vmem:[#allocation2 + $0x28] sm:$0xff] (!%p880_p9), %v263_v17  ;;  %v265_v23 = vpack.c.bf16 (!%p880_p9), %v257_v22, %v256_v20  ;;  %v275_v24 = vstv (!%p880_p9), %s274_s18 }
  0x24   : > { %272 = vst [vmem:[#allocation2 + $0x30] sm:$0xff] %v264_v21  ;;  %v276_v25 = vmul.f32 %v275_v24, %v242_v0  ;;  %v277_v26 = vmul.f32 %v275_v24, %v243_v1  ;;  %v278_v27 = vmul.f32 %v275_v24, %v244_v2  ;;  %v279_v28 = vmul.f32 %v275_v24, %v245_v4 }
  0x25   : > { %273 = vst [vmem:[#allocation2 + $0x38] sm:$0xff] %v265_v23  ;;  %v280_v29 = vmul.f32 %v275_v24, %v246_v5  ;;  %v281_v30 = vmul.f32 %v275_v24, %v247_v6  ;;  %v282_v31 = vmul.f32 %v275_v24, %v248_v9  ;;  %v283_v32 = vmul.f32 %v275_v24, %v249_v10 }
  0x26   : > { %292 = vst [vmem:[#allocation3] sm:$0xff] %v276_v25  ;;  %293 = vst [vmem:[#allocation3 + $0x8] sm:$0xff] %v277_v26  ;;  %v284_v33 = vmul.f32 %v275_v24, %v250_v11  ;;  %v285_v34 = vmul.f32 %v275_v24, %v251_v13  ;;  %v286_v35 = vmul.f32 %v275_v24, %v252_v14 }
  0x27   : > { %294 = vst [vmem:[#allocation3 + $0x10] sm:$0xff] %v278_v27  ;;  %295 = vst [vmem:[#allocation3 + $0x18] sm:$0xff] %v279_v28  ;;  %v287_v36 = vmul.f32 %v275_v24, %v253_v15  ;;  %v288_v37 = vmul.f32 %v275_v24, %v254_v18  ;;  %v289_v38 = vmul.f32 %v275_v24, %v255_v19 }
  0x28   : > { %296 = vst [vmem:[#allocation3 + $0x20] sm:$0xff] %v280_v29  ;;  %297 = vst [vmem:[#allocation3 + $0x28] sm:$0xff] %v281_v30  ;;  %v290_v39 = vmul.f32 %v275_v24, %v256_v20  ;;  %v291_v40 = vmul.f32 %v275_v24, %v257_v22 }
  0x29   : > { %298 = vst [vmem:[#allocation3 + $0x30] sm:$0xff] %v282_v31  ;;  %299 = vst [vmem:[#allocation3 + $0x38] sm:$0xff] %v283_v32 }
  0x2a   : > { %300 = vst [vmem:[#allocation3 + $0x40] sm:$0xff] %v284_v33  ;;  %301 = vst [vmem:[#allocation3 + $0x48] sm:$0xff] %v285_v34 }
  0x2b   : > { %302 = vst [vmem:[#allocation3 + $0x50] sm:$0xff] %v286_v35  ;;  %303 = vst [vmem:[#allocation3 + $0x58] sm:$0xff] %v287_v36 }
  0x2c   : > { %304 = vst [vmem:[#allocation3 + $0x60] sm:$0xff] %v288_v37  ;;  %305 = vst [vmem:[#allocation3 + $0x68] sm:$0xff] %v289_v38 }
  0x2d   : > { %306 = vst [vmem:[#allocation3 + $0x70] sm:$0xff] %v290_v39  ;;  %307 = vst [vmem:[#allocation3 + $0x78] sm:$0xff] %v291_v40 }
  0x2e PF: > { %v1177_v43 = vld [vmem:[%s1120_s8] sm:$0xff]  ;;  %v1181_v45 = vld [vmem:[%s1120_s8 + $0x10] sm:$0xff]  ;;  %v1066_v48 = vmov 0   ;;  %v428_v51 = vld [vmem:[%s1125_s11 + $0x18] sm:$0xff]  ;;  %p881_p10 = scmp.ne.s32.totalorder %s1111_s0, 2 }
  0x2f   : > { %v312_v44 = vunpack.c.l.s8.bf16 %v1177_v43  ;;  %v316_v47 = vunpack.c.l.s8.bf16 %v1181_v45  ;;  %1034 = vset.pattern.permute.xlu1 %v1066_v48  ;;  %1033 = vset.pattern.permute.xlu0 %v1066_v48  ;;  %v427_v49 = vld [vmem:[%s1125_s11 + $0x10] sm:$0xff]  ;;  %v425_v50 = vld [vmem:[%s1125_s11] sm:$0xff]  ;;  %v426_v53 = vld [vmem:[%s1125_s11 + $0x8] sm:$0xff]  ;;  %v313_v5 = vunpack.c.h.s8.bf16 %v1177_v43  ;;  %v317_v6 = vunpack.c.h.s8.bf16 %v1181_v45 }
  0x30   : > { %453 = vperm.xlu1 %1034, %v427_v49   ;;  %443 = vperm.xlu0 %1033, %v425_v50   ;;  %v430_v54 = vld [vmem:[%s1125_s11 + $0x28] sm:$0xff]  ;;  %v429_v56 = vld [vmem:[%s1125_s11 + $0x20] sm:$0xff]  ;;  %v432_v57 = vld [vmem:[%s1125_s11 + $0x38] sm:$0xff] }
  0x31   : > { %v320_v41 = vld [vmem:[#allocation2] sm:$0xff]  ;;  %943 = vmatprep.mubr.bf16.mxu0 %v312_v44  ;;  %951 = vmatprep.mubr.bf16.mxu1 %v316_v47  ;;  %v431_v59 = vld [vmem:[%s1125_s11 + $0x30] sm:$0xff]  ;;  %v434_v60 = vld [vmem:[%s1125_s11 + $0x48] sm:$0xff] }
  0x32   : > { %v321_v42 = vld [vmem:[#allocation2 + $0x8] sm:$0xff]  ;;  %927 = vmatprep.subr.bf16.mxu0 %v320_v41  ;;  %991 = vmatprep.subr.bf16.mxu1 %v320_v41  ;;  %v322_v46 = vld [vmem:[#allocation2 + $0x10] sm:$0xff]  ;;  %v433_v62 = vld [vmem:[%s1125_s11 + $0x40] sm:$0xff] }
  0x33   : > { %928 = vmatpush3.bf16.msra.mxu0 %v320_v41  ;;  %999 = vmatpush3.bf16.msra.mxu1 %v320_v41  ;;  %v323_v52 = vld [vmem:[#allocation2 + $0x18] sm:$0xff]  ;;  %v435_v1 = vld [vmem:[%s1125_s11 + $0x50] sm:$0xff]  ;;  %v438_v2 = vld [vmem:[%s1125_s11 + $0x68] sm:$0xff] }
  0x34   : > { %929 = vmatprep.subr.bf16.mxu0 %v321_v42  ;;  %992 = vmatprep.subr.bf16.mxu1 %v321_v42  ;;  %v324_v55 = vld [vmem:[#allocation2 + $0x20] sm:$0xff]  ;;  %v325_v58 = vld [vmem:[#allocation2 + $0x28] sm:$0xff]  ;;  %v436_v63 = vld [vmem:[%s1125_s11 + $0x58] sm:$0xff] }
  0x35   : > { %458 = vperm.xlu1 %1034, %v428_v51   ;;  %448 = vperm.xlu0 %1033, %v426_v53   ;;  %v326_v61 = vld [vmem:[#allocation2 + $0x30] sm:$0xff]  ;;  %v327_v0 = vld [vmem:[#allocation2 + $0x38] sm:$0xff]  ;;  %v309_v3 = vld [vmem:[%s1120_s8 + $0x8] sm:$0xff] }
  0x36   : > { %v311_v4 = vld [vmem:[%s1120_s8 + $0x18] sm:$0xff]  ;;  %v437_v7 = vld [vmem:[%s1125_s11 + $0x60] sm:$0xff]  ;;  %v314_v8 = vunpack.c.l.s8.bf16 %v309_v3  ;;  %v439_v11 = vld [vmem:[%s1125_s11 + $0x70] sm:$0xff]  ;;  %v315_v12 = vunpack.c.h.s8.bf16 %v309_v3  ;;  %s569_s8 = sadd.s32 1, %s1111_s0 }
  0x37   : > { %930 = vmatpush3.bf16.msra.mxu0 %v321_v42  ;;  %1000 = vmatpush3.bf16.msra.mxu1 %v321_v42  ;;  %v318_v9 = vunpack.c.l.s8.bf16 %v311_v4  ;;  %v440_v10 = vld [vmem:[%s1125_s11 + $0x78] sm:$0xff]  ;;  %v319_v13 = vunpack.c.h.s8.bf16 %v311_v4  ;;  %s570_s11 = sld [smem:[#allocation5 + %s569_s8]]  ;;  %v555_v35 = vld [vmem:[#allocation3 + $0x10] sm:$0xff]  ;;  %v553_v43 = vld [vmem:[#allocation3] sm:$0xff] }
  0x38   : > { %931 = vmatprep.subr.bf16.mxu0 %v322_v46  ;;  %993 = vmatprep.subr.bf16.mxu1 %v322_v46  ;;  %v563_v36 = vld [vmem:[#allocation3 + $0x50] sm:$0xff]  ;;  %v561_v44 = vld [vmem:[#allocation3 + $0x40] sm:$0xff]  ;;  %v556_v51 = vld [vmem:[#allocation3 + $0x18] sm:$0xff] }
  0x39   : > { %468 = vperm.xlu1 %1034, %v430_v54   ;;  %463 = vperm.xlu0 %1033, %v429_v56  }
  0x3b   : > { %932 = vmatpush3.bf16.msra.mxu0 %v322_v46  ;;  %1001 = vmatpush3.bf16.msra.mxu1 %v322_v46 }
  0x3c   : > { %933 = vmatprep.subr.bf16.mxu0 %v323_v52  ;;  %994 = vmatprep.subr.bf16.mxu1 %v323_v52 }
  0x3d   : > { %478 = vperm.xlu1 %1034, %v432_v57   ;;  %473 = vperm.xlu0 %1033, %v431_v59   ;;  %v1217_v29 = vstv %s570_s11 }
  0x3f   : > { %934 = vmatpush3.bf16.msra.mxu0 %v323_v52  ;;  %1002 = vmatpush3.bf16.msra.mxu1 %v323_v52 }
  0x40   : > { %935 = vmatprep.subr.bf16.mxu0 %v324_v55  ;;  %995 = vmatprep.subr.bf16.mxu1 %v324_v55 }
  0x41   : > { %488 = vperm.xlu1 %1034, %v434_v60   ;;  %483 = vperm.xlu0 %1033, %v433_v62  }
  0x43   : > { %936 = vmatpush3.bf16.msra.mxu0 %v324_v55  ;;  %1003 = vmatpush3.bf16.msra.mxu1 %v324_v55 }
  0x44   : > { %937 = vmatprep.subr.bf16.mxu0 %v325_v58  ;;  %996 = vmatprep.subr.bf16.mxu1 %v325_v58 }
  0x45   : > { %498 = vperm.xlu1 %1034, %v436_v63   ;;  %493 = vperm.xlu0 %1033, %v435_v1   ;;  %v554_v63 = vld [vmem:[#allocation3 + $0x8] sm:$0xff] }
  0x47   : > { %938 = vmatpush3.bf16.msra.mxu0 %v325_v58  ;;  %1004 = vmatpush3.bf16.msra.mxu1 %v325_v58  ;;  %v564_v58 = vld [vmem:[#allocation3 + $0x58] sm:$0xff] }
  0x48   : > { %939 = vmatprep.subr.bf16.mxu0 %v326_v61  ;;  %997 = vmatprep.subr.bf16.mxu1 %v326_v61 }
  0x49   : > { %508 = vperm.xlu1 %1034, %v438_v2   ;;  %503 = vperm.xlu0 %1033, %v437_v7  }
  0x4b   : > { %940 = vmatpush3.bf16.msra.mxu0 %v326_v61  ;;  %1005 = vmatpush3.bf16.msra.mxu1 %v326_v61 }
  0x4c   : > { %941 = vmatprep.subr.bf16.mxu0 %v327_v0  ;;  %998 = vmatprep.subr.bf16.mxu1 %v327_v0 }
  0x4d   : > { %518 = vperm.xlu1 %1034, %v440_v10   ;;  %513 = vperm.xlu0 %1033, %v439_v11  }
  0x4f   : > { %942 = vmatpush3.bf16.msra.mxu0 %v327_v0  ;;  %1006 = vmatpush3.bf16.msra.mxu1 %v327_v0 }
  0x52   : > { %944 = vmatmul.mubr.bf16.vlgmr.msra.gmra.mrb[0].mxu0 %v313_v5  ;;  %952 = vmatmul.mubr.bf16.vlgmr.msra.gmra.mrb[0].mxu1 %v317_v6  ;;  %v562_v6 = vld [vmem:[#allocation3 + $0x48] sm:$0xff] }
  0x53   : > { %947 = vmatprep.mubr.bf16.mxu0 %v314_v8  ;;  %955 = vmatprep.mubr.bf16.mxu1 %v318_v9 }
  0x5a   : > { %948 = vmatmul.mubr.bf16.gmra.mrb[4].mxu0 %v315_v12  ;;  %956 = vmatmul.mubr.bf16.gmra.mrb[4].mxu1 %v319_v13 }
  0xaf   : > { %v454_v14 = vpop.permute.xlu1 %453  ;;  %v444_v15 = vpop.permute.xlu0 %443 }
  0xb4   : > { %v459_v16 = vpop.permute.xlu1 %458  ;;  %v449_v17 = vpop.permute.xlu0 %448 }
  0xb8   : > { %v1204_v18 = vpop.permute.xlu1 %468  ;;  %v1206_v19 = vpop.permute.xlu0 %463 }
  0xbc   : > { %v1208_v20 = vpop.permute.xlu1 %478  ;;  %v1210_v21 = vpop.permute.xlu0 %473 }
  0xc0   : > { %v489_v22 = vpop.permute.xlu1 %488  ;;  %v484_v23 = vpop.permute.xlu0 %483 }
  0xc4   : > { %v499_v24 = vpop.permute.xlu1 %498  ;;  %v494_v25 = vpop.permute.xlu0 %493 }
  0xc8   : > { %v1213_v26 = vpop.permute.xlu1 %508  ;;  %v1215_v27 = vpop.permute.xlu0 %503 }
  0xcc   : > { %v519_v0 = vpop.permute.xlu1 %518  ;;  %v514_v1 = vpop.permute.xlu0 %513 }
 0x125   : > { %v945_v28 = vpop.f32.mrb[0].mxu0  ;;  %v953_v30 = vpop.f32.mrb[0].mxu1 }
 0x126   : > { %v523_v31 = vmul.f32 %v945_v28, %v454_v14  ;;  %v531_v32 = vmul.f32 %v953_v30, %v494_v25  ;;  %v362_v33 = vpop.f32.mrb[1].mxu0  ;;  %v394_v34 = vpop.f32.mrb[1].mxu1 }
 0x127   : > { %v521_v37 = vmul.f32 %v444_v15, %v362_v33  ;;  %v529_v38 = vmul.f32 %v484_v23, %v394_v34  ;;  %v946_v39 = vpop.f32.mrb[2].mxu0  ;;  %v954_v40 = vpop.f32.mrb[2].mxu1 }
 0x128   : > { %v574_v41 = vmul.f32 %v1217_v29, %v523_v31  ;;  %v582_v42 = vmul.f32 %v1217_v29, %v531_v32  ;;  %v524_v45 = vmul.f32 %v946_v39, %v459_v16  ;;  %v532_v46 = vmul.f32 %v954_v40, %v499_v24  ;;  %v365_v47 = vpop.f32.mrb[3].mxu0  ;;  %v397_v48 = vpop.f32.mrb[3].mxu1 }
 0x129   : > { %v572_v49 = vmul.f32 %v1217_v29, %v521_v37  ;;  %v580_v50 = vmul.f32 %v1217_v29, %v529_v38  ;;  %v522_v52 = vmul.f32 %v449_v17, %v365_v47  ;;  %v530_v53 = vmul.f32 %v489_v22, %v397_v48  ;;  %v559_v17 = vld [vmem:[#allocation3 + $0x30] sm:$0xff]  ;;  %v558_v48 = vld [vmem:[#allocation3 + $0x28] sm:$0xff] }
 0x12a   : > { %v590_v54 = vadd.f32 %v574_v41, %v555_v35  ;;  %v598_v55 = vadd.f32 %v582_v42, %v563_v36  ;;  %v538_v56 = vpack.c.bf16 %v524_v45, %v523_v31  ;;  %v575_v57 = vmul.f32 %v1217_v29, %v524_v45  ;;  %v567_v22 = vld [vmem:[#allocation3 + $0x70] sm:$0xff] }
 0x12b   : > { %v588_v59 = vadd.f32 %v572_v49, %v553_v43  ;;  %v596_v60 = vadd.f32 %v580_v50, %v561_v44  ;;  %v542_v61 = vpack.c.bf16 %v532_v46, %v531_v32  ;;  %v583_v62 = vmul.f32 %v1217_v29, %v532_v46  ;;  %v557_v32 = vld [vmem:[#allocation3 + $0x20] sm:$0xff]  ;;  %v568_v44 = vld [vmem:[#allocation3 + $0x78] sm:$0xff] }
 0x12c   : > { %606 = vst [vmem:[#allocation3 + $0x10] sm:$0xff] %v590_v54  ;;  %614 = vst [vmem:[#allocation3 + $0x50] sm:$0xff] %v598_v55  ;;  %v591_v2 = vadd.f32 %v575_v57, %v556_v51  ;;  %v537_v3 = vpack.c.bf16 %v522_v52, %v521_v37  ;;  %v573_v4 = vmul.f32 %v1217_v29, %v522_v52  ;;  %v566_v51 = vld [vmem:[#allocation3 + $0x68] sm:$0xff] }
 0x12d   : > { %546 = vst [vmem:[#allocation2 + $0x8] sm:$0xff] %v538_v56  ;;  %v541_v5 = vpack.c.bf16 %v530_v53, %v529_v38  ;;  %604 = vst [vmem:[#allocation3] sm:$0xff] %v588_v59  ;;  %v599_v7 = vadd.f32 %v583_v62, %v564_v58  ;;  %v581_v8 = vmul.f32 %v1217_v29, %v530_v53  ;;  %v949_v9 = vpop.f32.mrb[4].mxu0  ;;  %v957_v10 = vpop.f32.mrb[4].mxu1  ;;  %v1035_v56 = vld [vmem:[%s1324_s4] sm:$0xff] (!%p881_p10)   ;;  %v1036_v57 = vld [vmem:[%s1324_s4 + $0x8] sm:$0xff] (!%p881_p10)  }
 0x12e   : > { %612 = vst [vmem:[#allocation3 + $0x40] sm:$0xff] %v596_v60  ;;  %550 = vst [vmem:[#allocation2 + $0x28] sm:$0xff] %v542_v61  ;;  %v589_v11 = vadd.f32 %v573_v4, %v554_v63  ;;  %v527_v12 = vmul.f32 %v949_v9, %v1210_v21  ;;  %v535_v13 = vmul.f32 %v957_v10, %v514_v1  ;;  %v378_v14 = vpop.f32.mrb[5].mxu0  ;;  %v410_v15 = vpop.f32.mrb[5].mxu1  ;;  %v565_v21 = vld [vmem:[#allocation3 + $0x60] sm:$0xff]  ;;  %959 = vmatprep.subr.bf16.mxu0 (!%p881_p10), %v1035_v56  ;;  %v1038_v58 = vld [vmem:[%s1324_s4 + $0x18] sm:$0xff] (!%p881_p10)  }
 0x12f   : > { %607 = vst [vmem:[#allocation3 + $0x18] sm:$0xff] %v591_v2  ;;  %545 = vst [vmem:[#allocation2] sm:$0xff] %v537_v3  ;;  %v597_v16 = vadd.f32 %v581_v8, %v562_v6  ;;  %v525_v23 = vmul.f32 %v1206_v19, %v378_v14  ;;  %v533_v24 = vmul.f32 %v1215_v27, %v410_v15  ;;  %v950_v25 = vpop.f32.mrb[6].mxu0  ;;  %v958_v28 = vpop.f32.mrb[6].mxu1  ;;  %v560_v27 = vld [vmem:[#allocation3 + $0x38] sm:$0xff]  ;;  %1007 = vmatprep.subr.bf16.mxu1 (!%p881_p10), %v1035_v56  ;;  %v1039_v1 = vld [vmem:[%s1324_s4 + $0x20] sm:$0xff] (!%p881_p10)  }
 0x130   : > { %549 = vst [vmem:[#allocation2 + $0x20] sm:$0xff] %v541_v5  ;;  %615 = vst [vmem:[#allocation3 + $0x58] sm:$0xff] %v599_v7  ;;  %v578_v30 = vmul.f32 %v1217_v29, %v527_v12  ;;  %v586_v31 = vmul.f32 %v1217_v29, %v535_v13  ;;  %v528_v33 = vmul.f32 %v950_v25, %v1208_v20  ;;  %v381_v35 = vpop.f32.mrb[7].mxu0  ;;  %v413_v36 = vpop.f32.mrb[7].mxu1  ;;  %960 = vmatpush3.bf16.msra.mxu0 (!%p881_p10), %v1035_v56  ;;  %v1040_v2 = vld [vmem:[%s1324_s4 + $0x28] sm:$0xff] (!%p881_p10)   ;;  %v1041_v3 = vld [vmem:[%s1324_s4 + $0x30] sm:$0xff] (!%p881_p10)  }
 0x131   : > { %605 = vst [vmem:[#allocation3 + $0x8] sm:$0xff] %v589_v11  ;;  %v536_v34 = vmul.f32 %v958_v28, %v519_v0  ;;  %613 = vst [vmem:[#allocation3 + $0x48] sm:$0xff] %v597_v16  ;;  %v576_v37 = vmul.f32 %v1217_v29, %v525_v23  ;;  %v584_v19 = vmul.f32 %v1217_v29, %v533_v24  ;;  %1015 = vmatpush3.bf16.msra.mxu1 (!%p881_p10), %v1035_v56  ;;  %v1042_v4 = vld [vmem:[%s1324_s4 + $0x38] sm:$0xff] (!%p881_p10)  }
 0x132   : > { %v526_v38 = vmul.f32 %v1204_v18, %v381_v35  ;;  %v534_v39 = vmul.f32 %v1213_v26, %v413_v36  ;;  %v594_v40 = vadd.f32 %v578_v30, %v559_v17  ;;  %v602_v41 = vadd.f32 %v586_v31, %v567_v22  ;;  %961 = vmatprep.subr.bf16.mxu0 (!%p881_p10), %v1036_v57  ;;  %v882_v30 = vld [vmem:[%s1325_s5] ss:$0 sm:$0xff] (!%p881_p10) }
 0x133   : > { %v540_v42 = vpack.c.bf16 %v528_v33, %v527_v12  ;;  %v579_v43 = vmul.f32 %v1217_v29, %v528_v33  ;;  %v592_v20 = vadd.f32 %v576_v37, %v557_v32  ;;  %v600_v45 = vadd.f32 %v584_v19, %v565_v21  ;;  %1008 = vmatprep.subr.bf16.mxu1 (!%p881_p10), %v1036_v57  ;;  %v626_v5 = vld [vmem:[#allocation3 + $0x10] sm:$0xff] (!%p881_p10) }
 0x134   : > { %v544_v46 = vpack.c.bf16 %v536_v34, %v535_v13  ;;  %v587_v47 = vmul.f32 %v1217_v29, %v536_v34  ;;  %610 = vst [vmem:[#allocation3 + $0x30] sm:$0xff] %v594_v40  ;;  %618 = vst [vmem:[#allocation3 + $0x70] sm:$0xff] %v602_v41  ;;  %v539_v50 = vpack.c.bf16 %v526_v38, %v525_v23  ;;  %623 = sbr.rel (%p881_p10) target bundleno = 562 (0x232), region = 48  ;;  %962 = vmatpush3.bf16.msra.mxu0 (!%p881_p10), %v1036_v57  ;;  %v624_v59 = vld [vmem:[#allocation3] sm:$0xff] (!%p881_p10)  ;;  %v634_v7 = vld [vmem:[#allocation3 + $0x50] sm:$0xff] (!%p881_p10) }
 0x135   : > { %548 = vst [vmem:[#allocation2 + $0x18] sm:$0xff] %v540_v42  ;;  %v595_v49 = vadd.f32 %v579_v43, %v560_v27  ;;  %v577_v18 = vmul.f32 %v1217_v29, %v526_v38  ;;  %v543_v26 = vpack.c.bf16 %v534_v39, %v533_v24  ;;  %608 = vst [vmem:[#allocation3 + $0x20] sm:$0xff] %v592_v20  ;;  %1016 = vmatpush3.bf16.msra.mxu1 (!%p881_p10), %v1036_v57  ;;  %v632_v61 = vld [vmem:[#allocation3 + $0x40] sm:$0xff] (!%p881_p10) }
 0x136   : > { %616 = vst [vmem:[#allocation3 + $0x60] sm:$0xff] %v600_v45  ;;  %552 = vst [vmem:[#allocation2 + $0x38] sm:$0xff] %v544_v46  ;;  %v603_v52 = vadd.f32 %v587_v47, %v568_v44  ;;  %v585_v53 = vmul.f32 %v1217_v29, %v534_v39  ;;  %v1037_v29 = vld [vmem:[%s1324_s4 + $0x10] sm:$0xff] (!%p881_p10)   ;;  %v627_v6 = vld [vmem:[#allocation3 + $0x18] sm:$0xff] (!%p881_p10) }
 0x137   : > { %611 = vst [vmem:[#allocation3 + $0x38] sm:$0xff] %v595_v49  ;;  %547 = vst [vmem:[#allocation2 + $0x10] sm:$0xff] %v539_v50  ;;  %v593_v54 = vadd.f32 %v577_v18, %v558_v48  ;;  %963 = vmatprep.subr.bf16.mxu0 (!%p881_p10), %v1037_v29  ;;  %1009 = vmatprep.subr.bf16.mxu1 (!%p881_p10), %v1037_v29  ;;  %v635_v8 = vld [vmem:[#allocation3 + $0x58] sm:$0xff] (!%p881_p10)  ;;  %v641_v13 = vpack.c.bf16 (!%p881_p10), %v627_v6, %v626_v5 }
 0x138   : > { %551 = vst [vmem:[#allocation2 + $0x30] sm:$0xff] %v543_v26  ;;  %619 = vst [vmem:[#allocation3 + $0x78] sm:$0xff] %v603_v52  ;;  %v601_v55 = vadd.f32 %v585_v53, %v566_v51  ;;  %v625_v60 = vld [vmem:[#allocation3 + $0x8] sm:$0xff] (!%p881_p10)  ;;  %964 = vmatpush3.bf16.msra.mxu0 (!%p881_p10), %v1037_v29  ;;  %v645_v14 = vpack.c.bf16 (!%p881_p10), %v635_v8, %v634_v7 }
 0x139   : > { %609 = vst [vmem:[#allocation3 + $0x28] sm:$0xff] %v593_v54  ;;  %v640_v62 = vpack.c.bf16 (!%p881_p10), %v625_v60, %v624_v59  ;;  %v633_v63 = vld [vmem:[#allocation3 + $0x48] sm:$0xff] (!%p881_p10)  ;;  %1017 = vmatpush3.bf16.msra.mxu1 (!%p881_p10), %v1037_v29  ;;  %965 = vmatprep.subr.bf16.mxu0 (!%p881_p10), %v1038_v58 }
 0x13a   : > { %617 = vst [vmem:[#allocation3 + $0x68] sm:$0xff] %v601_v55  ;;  %v644_v0 = vpack.c.bf16 (!%p881_p10), %v633_v63, %v632_v61  ;;  %1010 = vmatprep.subr.bf16.mxu1 (!%p881_p10), %v1038_v58 }
 0x13b   : > { %975 = vmatprep.mubr.bf16.mxu0 %v640_v62  ;;  %v630_v17 = vld [vmem:[#allocation3 + $0x30] sm:$0xff] }
 0x13c   : > { %983 = vmatprep.mubr.bf16.mxu1 %v644_v0  ;;  %966 = vmatpush3.bf16.msra.mxu0 %v1038_v58  ;;  %v628_v9 = vld [vmem:[#allocation3 + $0x20] sm:$0xff]  ;;  %v638_v23 = vld [vmem:[#allocation3 + $0x70] sm:$0xff] }
 0x13d   : > { %1018 = vmatpush3.bf16.msra.mxu1 %v1038_v58  ;;  %967 = vmatprep.subr.bf16.mxu0 %v1039_v1  ;;  %v636_v11 = vld [vmem:[#allocation3 + $0x60] sm:$0xff] }
 0x13e   : > { %1011 = vmatprep.subr.bf16.mxu1 %v1039_v1  ;;  %v631_v22 = vld [vmem:[#allocation3 + $0x38] sm:$0xff] }
 0x13f   : > { %v639_v24 = vld [vmem:[#allocation3 + $0x78] sm:$0xff]  ;;  %v643_v25 = vpack.c.bf16 %v631_v22, %v630_v17 }
 0x140   : > { %968 = vmatpush3.bf16.msra.mxu0 %v1039_v1  ;;  %v629_v10 = vld [vmem:[#allocation3 + $0x28] sm:$0xff]  ;;  %v647_v28 = vpack.c.bf16 %v639_v24, %v638_v23 }
 0x141   : > { %1019 = vmatpush3.bf16.msra.mxu1 %v1039_v1  ;;  %969 = vmatprep.subr.bf16.mxu0 %v1040_v2  ;;  %v637_v12 = vld [vmem:[#allocation3 + $0x68] sm:$0xff]  ;;  %v642_v15 = vpack.c.bf16 %v629_v10, %v628_v9 }
 0x142   : > { %1012 = vmatprep.subr.bf16.mxu1 %v1040_v2  ;;  %v646_v16 = vpack.c.bf16 %v637_v12, %v636_v11 }
 0x144   : > { %970 = vmatpush3.bf16.msra.mxu0 %v1040_v2 }
 0x145   : > { %1020 = vmatpush3.bf16.msra.mxu1 %v1040_v2  ;;  %971 = vmatprep.subr.bf16.mxu0 %v1041_v3 }
 0x146   : > { %1013 = vmatprep.subr.bf16.mxu1 %v1041_v3 }
 0x148   : > { %972 = vmatpush3.bf16.msra.mxu0 %v1041_v3 }
 0x149   : > { %1021 = vmatpush3.bf16.msra.mxu1 %v1041_v3  ;;  %973 = vmatprep.subr.bf16.mxu0 %v1042_v4 }
 0x14a   : > { %1014 = vmatprep.subr.bf16.mxu1 %v1042_v4 }
 0x14c   : > { %974 = vmatpush3.bf16.msra.mxu0 %v1042_v4 }
 0x14d   : > { %1022 = vmatpush3.bf16.msra.mxu1 %v1042_v4 }
 0x14f   : > { %976 = vmatmul.mubr.bf16.vlgmr.msra.gmra.mrb[0].mxu0 %v641_v13 }
 0x150   : > { %984 = vmatmul.mubr.bf16.vlgmr.msra.gmra.mrb[0].mxu1 %v645_v14  ;;  %979 = vmatprep.mubr.bf16.mxu0 %v642_v15 }
 0x151   : > { %987 = vmatprep.mubr.bf16.mxu1 %v646_v16 }
 0x157   : > { %980 = vmatmul.mubr.bf16.gmra.mrb[4].mxu0 %v643_v25 }
 0x158   : > { %988 = vmatmul.mubr.bf16.gmra.mrb[4].mxu1 %v647_v28 }
 0x222   : > { %v977_v31 = vpop.f32.mrb[0].mxu0 }
 0x223   : > { %v985_v32 = vpop.f32.mrb[0].mxu1  ;;  %v762_v21 = vadd.f32 %v977_v31, %v882_v30  ;;  %v753_v34 = vpop.f32.mrb[1].mxu0 }
 0x224   : > { %v794_v33 = vadd.f32 %v985_v32, %v882_v30  ;;  %v785_v35 = vpop.f32.mrb[1].mxu1  ;;  %v754_v36 = vadd.f32 %v882_v30, %v753_v34  ;;  %v978_v19 = vpop.f32.mrb[2].mxu0 }
 0x225   : > { %v786_v37 = vadd.f32 %v882_v30, %v785_v35  ;;  %v986_v27 = vpop.f32.mrb[2].mxu1  ;;  %818 = vst [vmem:[%s1326_s6 + $0x10] sm:$0xff] %v762_v21  ;;  %v765_v38 = vadd.f32 %v978_v19, %v882_v30  ;;  %v756_v40 = vpop.f32.mrb[3].mxu0 }
 0x226   : > { %826 = vst [vmem:[%s1326_s6 + $0x50] sm:$0xff] %v794_v33  ;;  %v797_v39 = vadd.f32 %v986_v27, %v882_v30  ;;  %v788_v41 = vpop.f32.mrb[3].mxu1  ;;  %816 = vst [vmem:[%s1326_s6] sm:$0xff] %v754_v36  ;;  %v757_v42 = vadd.f32 %v882_v30, %v756_v40 }
 0x227   : > { %824 = vst [vmem:[%s1326_s6 + $0x40] sm:$0xff] %v786_v37  ;;  %v789_v43 = vadd.f32 %v882_v30, %v788_v41  ;;  %819 = vst [vmem:[%s1326_s6 + $0x18] sm:$0xff] %v765_v38 }
 0x228   : > { %827 = vst [vmem:[%s1326_s6 + $0x58] sm:$0xff] %v797_v39  ;;  %817 = vst [vmem:[%s1326_s6 + $0x8] sm:$0xff] %v757_v42 }
 0x229   : > { %825 = vst [vmem:[%s1326_s6 + $0x48] sm:$0xff] %v789_v43 }
 0x22a   : > { %v981_v44 = vpop.f32.mrb[4].mxu0 }
 0x22b   : > { %v989_v20 = vpop.f32.mrb[4].mxu1  ;;  %v778_v45 = vadd.f32 %v981_v44, %v882_v30  ;;  %v769_v47 = vpop.f32.mrb[5].mxu0 }
 0x22c   : > { %v810_v46 = vadd.f32 %v989_v20, %v882_v30  ;;  %v801_v48 = vpop.f32.mrb[5].mxu1  ;;  %v770_v49 = vadd.f32 %v882_v30, %v769_v47  ;;  %v982_v18 = vpop.f32.mrb[6].mxu0 }
 0x22d   : > { %v802_v50 = vadd.f32 %v882_v30, %v801_v48  ;;  %v990_v26 = vpop.f32.mrb[6].mxu1  ;;  %822 = vst [vmem:[%s1326_s6 + $0x30] sm:$0xff] %v778_v45  ;;  %v781_v51 = vadd.f32 %v982_v18, %v882_v30  ;;  %v772_v53 = vpop.f32.mrb[7].mxu0 }
 0x22e   : > { %830 = vst [vmem:[%s1326_s6 + $0x70] sm:$0xff] %v810_v46  ;;  %v813_v52 = vadd.f32 %v990_v26, %v882_v30  ;;  %v804_v54 = vpop.f32.mrb[7].mxu1  ;;  %820 = vst [vmem:[%s1326_s6 + $0x20] sm:$0xff] %v770_v49  ;;  %v773_v55 = vadd.f32 %v882_v30, %v772_v53 }
 0x22f   : > { %828 = vst [vmem:[%s1326_s6 + $0x60] sm:$0xff] %v802_v50  ;;  %v805_v56 = vadd.f32 %v882_v30, %v804_v54  ;;  %823 = vst [vmem:[%s1326_s6 + $0x38] sm:$0xff] %v781_v51 }
 0x230   : > { %831 = vst [vmem:[%s1326_s6 + $0x78] sm:$0xff] %v813_v52  ;;  %821 = vst [vmem:[%s1326_s6 + $0x28] sm:$0xff] %v773_v55 }
 0x231   : > { %829 = vst [vmem:[%s1326_s6 + $0x68] sm:$0xff] %v805_v56 }
 0x232 PF: > { %s22_s26 = sadd.s32 1, %s1063_s26  }
 0x233   : > { %p19_p11 = scmp.ge.s32.totalorder %s22_s26, 5  }
 0x235   :  { %21 = sbr.rel (!%p19_p11) target bundleno = 16 (0x10), region = 77 }

</bundles_post_ra>
